<compile_context>
chip_gen: v5e
topology: v5e:2x2
jax: 0.10.0
libtpu: 0.0.40
codegen_flags: <defaults>
</compile_context>

<pallas_src>
import functools

import jax
import jax.numpy as jnp
from jax.experimental import pallas as pl
from jax.experimental.pallas import tpu as pltpu


HALO_BLOCK = 16  # rows of the "next-tile head" block (bf16 sublane packing = 16)


def _round_up(x, m):
    return (x + m - 1) // m * m


def _default_tiling():
    """Per-TPU-generation (l_tile, vmem_limit_bytes) defaults."""
    try:
        kind = jax.devices()[0].device_kind.lower().replace(" ", "")
    except Exception:
        kind = ""
    if "v7" in kind or "7x" in kind:
        # v7x: 64 MiB physical VMEM per TensorCore -> stay under ~30 MiB scoped.
        return 256, 30 * 1024 * 1024
    if any(g in kind for g in ("v4", "v5", "v6")):
        # 128 MiB physical VMEM: big tiles + raised scoped limit.
        return 512, 64 * 1024 * 1024
    return 256, None  # unknown generation: conservative, compiler-default VMEM


def simple_conv_kernel(x_ref, halo_ref, w1_ref, b1_ref, w2_ref, b2_ref, o_ref,
                       *, seq_len, halo):
    """One (batch, L-tile) program: fused conv1(k=5) -> ReLU -> conv2(k=3)."""
    l_tile, cin = x_ref.shape[1], x_ref.shape[2]
    chid = w1_ref.shape[1]
    k1 = w1_ref.shape[0] // cin
    k2 = w2_ref.shape[0] // chid
    wh = l_tile + (k2 - 1)            # conv1 rows needed by conv2 (1-row halo/side)

    # bf16 window = aligned tile + 2*halo rows from the next tile's head block.
    # (Only in-kernel copy left; everything else feeds the MXU directly.)
    win = jnp.concatenate([x_ref[0], halo_ref[0, :2 * halo, :]], axis=0)

    # --- Conv1 (k=5, pad=2): tap-wise bf16 matmuls, f32 accumulation.
    h = jnp.dot(win[0:wh, :], w1_ref[0:cin, :],
                preferred_element_type=jnp.float32)
    for k in range(1, k1):
        h = h + jnp.dot(win[k:k + wh, :], w1_ref[k * cin:(k + 1) * cin, :],
                        preferred_element_type=jnp.float32)
    h = jnp.maximum(h + b1_ref[0], 0.0)   # bias + ReLU (Dropout = identity, p=0)

    # Rows of h outside the real sequence are conv2's zero padding: force them
    # to exactly zero (not "conv1 evaluated past the edge").  (wh, 1) column
    # mask; jnp.where broadcasts it over the channel lanes.
    t = pl.program_id(1)
    r = t * l_tile + jax.lax.broadcasted_iota(jnp.int32, (wh, 1), 0) - (k2 // 2)
    h = jnp.where((r >= 0) & (r < seq_len), h, 0.0)

    # --- Conv2 (k=3, pad=1): tap-wise bf16 matmuls; Cout padded to 128 lanes
    # in the wrapper so the store below is lane-dense (unmasked vst), bf16.
    hb = h.astype(jnp.bfloat16)
    y = jnp.dot(hb[0:l_tile, :], w2_ref[0:chid, :],
                preferred_element_type=jnp.float32)
    for k in range(1, k2):
        y = y + jnp.dot(hb[k:k + l_tile, :], w2_ref[k * chid:(k + 1) * chid, :],
                        preferred_element_type=jnp.float32)
    o_ref[0] = (y + b2_ref[0]).astype(o_ref.dtype)


def simple_conv_forward(x, gamma, beta, run_mean, run_var,
                        v1, g1, b1, v2, g2, b2, *, eps=1e-5,
                        l_tile=None, vmem_limit_bytes=None):
    """SimpleConv forward (eval mode). x: (B, L, in_dim) -> (B, L, out_dim) f32."""
    B, L, cin = x.shape
    chid, _, k1 = v1.shape               # (Chid, Cin, 5)
    cout, _, k2 = v2.shape               # (Cout, Chid, 3)
    halo = k1 // 2 + k2 // 2             # total halo per side for the fused convs
    assert 2 * halo <= HALO_BLOCK

    # weight_norm(dim=None): W = g * V / ||V||_F (scalar g, Frobenius norm).
    w1 = (g1 / jnp.linalg.norm(v1)) * v1
    w2 = (g2 / jnp.linalg.norm(v2)) * v2

    # Tap-major weight layout (row index = k*Cin_layer + i).  Conv2 output
    # channels zero-padded to a multiple of 128 -> lane-dense output stores.
    w1_col = jnp.transpose(w1, (2, 1, 0)).reshape(k1 * cin, chid).astype(jnp.bfloat16)
    cout_p = _round_up(max(cout, 128), 128)
    w2_col = jnp.transpose(w2, (2, 1, 0)).reshape(k2 * chid, cout)
    w2_col = jnp.pad(w2_col, ((0, 0), (0, cout_p - cout))).astype(jnp.bfloat16)
    b1_r = b1.astype(jnp.float32).reshape(1, chid)
    b2_p = jnp.pad(b2, (0, cout_p - cout)).astype(jnp.float32).reshape(1, cout_p)

    # Per-generation tile / VMEM defaults.
    d_tile, d_vmem = _default_tiling()
    if l_tile is None:
        l_tile = d_tile
    if vmem_limit_bytes is None:
        vmem_limit_bytes = d_vmem
    l_tile = max(HALO_BLOCK,
                 _round_up(min(l_tile, _round_up(L, HALO_BLOCK)), HALO_BLOCK))
    l_pad = _round_up(L, l_tile)
    nt = l_pad // l_tile
    hb16 = l_tile // HALO_BLOCK

    # Eval-mode BatchNorm folded to a per-channel affine + bf16 cast + zero pad:
    # one fused XLA pass over the input.  The kernel reads this padded array
    # directly (no overlapping-window gather in HBM).  Left pad = conv halo;
    # right pad covers halo + tile remainder + the last tile's 16-row halo block.
    bn_scale = gamma / jnp.sqrt(run_var + eps)
    bn_shift = beta - run_mean * bn_scale
    xbn = (x * bn_scale + bn_shift).astype(jnp.bfloat16)
    xbn = jnp.pad(xbn, ((0, 0), (halo, l_pad + HALO_BLOCK - L - halo), (0, 0)))

    kernel = functools.partial(simple_conv_kernel, seq_len=L, halo=halo)
    single = pl.Buffered(1)   # grid-invariant operands: fetched once, 1 buffer

    out = pl.pallas_call(
        kernel,
        out_shape=jax.ShapeDtypeStruct((B, l_pad, cout_p), jnp.bfloat16),
        grid=(B, nt),
        in_specs=[
            # Aligned l_tile rows of the padded input (window rows 0..l_tile-1).
            pl.BlockSpec((1, l_tile, cin), lambda b, t: (b, t, 0)),
            # 16-row head of the next tile: supplies the 2*halo trailing rows.
            pl.BlockSpec((1, HALO_BLOCK, cin), lambda b, t: (b, (t + 1) * hb16, 0)),
            # Grid-invariant weights/biases (constant index_map, single-buffered).
            pl.BlockSpec((k1 * cin, chid), lambda b, t: (0, 0), pipeline_mode=single),
            pl.BlockSpec((1, chid), lambda b, t: (0, 0), pipeline_mode=single),
            pl.BlockSpec((k2 * chid, cout_p), lambda b, t: (0, 0), pipeline_mode=single),
            pl.BlockSpec((1, cout_p), lambda b, t: (0, 0), pipeline_mode=single),
        ],
        out_specs=pl.BlockSpec((1, l_tile, cout_p), lambda b, t: (b, t, 0)),
        compiler_params=pltpu.CompilerParams(
            # Both grid axes are fully independent.
            # TODO(synk): on v7x, try pltpu.CORE_PARALLEL on the batch axis if
            # plain "parallel" does not shard the grid across both TensorCores.
            dimension_semantics=("parallel", "parallel"),
            vmem_limit_bytes=vmem_limit_bytes),
    )(xbn, xbn, w1_col, b1_r, w2_col, b2_p)

    return out[:, :L, :cout].astype(jnp.float32)


def _ref_forward(x, gamma, beta, run_mean, run_var, v1, g1, b1, v2, g2, b2,
                 eps=1e-5):
    """Plain-JAX f32 reference (lax conv) for correctness check."""
    w1 = (g1 / jnp.linalg.norm(v1)) * v1
    w2 = (g2 / jnp.linalg.norm(v2)) * v2
    bn_scale = gamma / jnp.sqrt(run_var + eps)
    bn_shift = beta - run_mean * bn_scale
    xn = x * bn_scale + bn_shift                              # (B, L, Cin)
    xncl = jnp.transpose(xn, (0, 2, 1))                       # (B, Cin, L)
    h = jax.lax.conv_general_dilated(
        xncl, w1, (1,), [(2, 2)],
        dimension_numbers=("NCH", "OIH", "NCH")) + b1[None, :, None]
    h = jnp.maximum(h, 0.0)
    y = jax.lax.conv_general_dilated(
        h, w2, (1,), [(1, 1)],
        dimension_numbers=("NCH", "OIH", "NCH")) + b2[None, :, None]
    return jnp.transpose(y, (0, 2, 1))                        # (B, L, Cout)


if __name__ == "__main__":
    B, L, Cin, Chid, Cout = 2, 48, 8, 32, 16
    keys = jax.random.split(jax.random.PRNGKey(0), 9)

    x        = jax.random.normal(keys[0], (B, L, Cin), jnp.float32)
    gamma    = 1.0 + 0.1 * jax.random.normal(keys[1], (Cin,), jnp.float32)
    beta     = 0.1 * jax.random.normal(keys[2], (Cin,), jnp.float32)
    run_mean = 0.1 * jax.random.normal(keys[3], (Cin,), jnp.float32)
    run_var  = 1.0 + 0.1 * jnp.abs(jax.random.normal(keys[4], (Cin,), jnp.float32))
    v1       = 0.1 * jax.random.normal(keys[5], (Chid, Cin, 5), jnp.float32)
    b1       = 0.1 * jax.random.normal(keys[6], (Chid,), jnp.float32)
    v2       = 0.1 * jax.random.normal(keys[7], (Cout, Chid, 3), jnp.float32)
    b2       = 0.1 * jax.random.normal(keys[8], (Cout,), jnp.float32)
    # weight_norm default init: g = ||v|| (so initially W == v).
    g1 = jnp.linalg.norm(v1)
    g2 = jnp.linalg.norm(v2)

    ref = _ref_forward(x, gamma, beta, run_mean, run_var, v1, g1, b1, v2, g2, b2)

    # Multi-tile path: L=48 split into three l_tile=16 tiles -> exercises the
    # halo blocks and the sequence-boundary masking.
    out = simple_conv_forward(x, gamma, beta, run_mean, run_var,
                              v1, g1, b1, v2, g2, b2, l_tile=16)
    jax.block_until_ready(out)
    assert out.shape == (B, L, Cout)
    assert jnp.allclose(out, ref, atol=5e-2, rtol=5e-2), \
        float(jnp.max(jnp.abs(out - ref)))

    # Ragged L (not a multiple of l_tile) -> exercises tail masking / crop.
    x2 = x[:, :45, :]
    out2 = simple_conv_forward(x2, gamma, beta, run_mean, run_var,
                               v1, g1, b1, v2, g2, b2, l_tile=16)
    jax.block_until_ready(out2)
    ref2 = _ref_forward(x2, gamma, beta, run_mean, run_var, v1, g1, b1, v2, g2, b2)
    assert out2.shape == (B, 45, Cout)
    assert jnp.allclose(out2, ref2, atol=5e-2, rtol=5e-2), \
        float(jnp.max(jnp.abs(out2 - ref2)))

    # Default (device-derived) tiling / VMEM-limit path.
    out3 = simple_conv_forward(x, gamma, beta, run_mean, run_var,
                               v1, g1, b1, v2, g2, b2)
    jax.block_until_ready(out3)
    assert jnp.allclose(out3, ref, atol=5e-2, rtol=5e-2), \
        float(jnp.max(jnp.abs(out3 - ref)))

    print("KERNEL_OK")
</pallas_src>

<mosaic_0001>
module attributes {stable_mosaic.version = 11 : i64} {
  func.func @simple_conv_kernel(%arg0: i32, %arg1: i32, %arg2: memref<1x16x8xbf16, #tpu.memory_space<vmem>>, %arg3: memref<1x16x8xbf16, #tpu.memory_space<vmem>>, %arg4: memref<40x32xbf16, #tpu.memory_space<vmem>>, %arg5: memref<1x32xf32, #tpu.memory_space<vmem>>, %arg6: memref<96x128xbf16, #tpu.memory_space<vmem>>, %arg7: memref<1x128xf32, #tpu.memory_space<vmem>>, %arg8: memref<1x16x128xbf16, #tpu.memory_space<vmem>>) attributes {dimension_semantics = [#tpu.dimension_semantics<parallel>, #tpu.dimension_semantics<parallel>], iteration_bounds = array<i64: 2, 3>, scalar_prefetch = 0 : i64, scratch_operands = 0 : i64, tpu.core_type = #tpu.core_type<tc>, window_params = [{transform_indices = @transform_0, window_bounds = array<i64: 1, 16, 8>}, {transform_indices = @transform_1, window_bounds = array<i64: 1, 16, 8>}, {pipeline_mode = #tpu.pipeline_mode<synchronous>, transform_indices = @transform_2, window_bounds = array<i64: 40, 32>}, {pipeline_mode = #tpu.pipeline_mode<synchronous>, transform_indices = @transform_3, window_bounds = array<i64: 1, 32>}, {pipeline_mode = #tpu.pipeline_mode<synchronous>, transform_indices = @transform_4, window_bounds = array<i64: 96, 128>}, {pipeline_mode = #tpu.pipeline_mode<synchronous>, transform_indices = @transform_5, window_bounds = array<i64: 1, 128>}, {transform_indices = @transform_6, window_bounds = array<i64: 1, 16, 128>}]} {
    %c0 = arith.constant 0 : index
    %c0_0 = arith.constant 0 : index
    %c0_1 = arith.constant 0 : index
    %0 = vector.load %arg2[%c0, %c0_0, %c0_1] : memref<1x16x8xbf16, #tpu.memory_space<vmem>>, vector<1x16x8xbf16>
    %1 = vector.shape_cast %0 : vector<1x16x8xbf16> to vector<16x8xbf16>
    %c0_2 = arith.constant 0 : index
    %c0_3 = arith.constant 0 : index
    %c0_4 = arith.constant 0 : index
    %2 = vector.load %arg3[%c0_2, %c0_3, %c0_4] : memref<1x16x8xbf16, #tpu.memory_space<vmem>>, vector<1x6x8xbf16>
    %3 = vector.shape_cast %2 : vector<1x6x8xbf16> to vector<6x8xbf16>
    %4 = tpu.concatenate %1, %3 in 0 : vector<16x8xbf16>, vector<6x8xbf16> -> vector<22x8xbf16>
    %5 = vector.extract_strided_slice %4 {offsets = [0, 0], sizes = [18, 8], strides = [1, 1]} : vector<22x8xbf16> to vector<18x8xbf16>
    %c0_5 = arith.constant 0 : index
    %c0_6 = arith.constant 0 : index
    %6 = vector.load %arg4[%c0_5, %c0_6] : memref<40x32xbf16, #tpu.memory_space<vmem>>, vector<8x32xbf16>
    %cst = arith.constant dense<0.000000e+00> : vector<18x32xf32>
    %7 = tpu.matmul %5, %6, %cst {dimension_numbers = #tpu.dot_dimension_numbers<[1], [0], [0], [1], [0, 0, 1, 1], [], []>} : vector<18x8xbf16>, vector<8x32xbf16>, vector<18x32xf32> -> vector<18x32xf32>
    %8 = vector.extract_strided_slice %4 {offsets = [1, 0], sizes = [18, 8], strides = [1, 1]} : vector<22x8xbf16> to vector<18x8xbf16>
    %c8 = arith.constant 8 : index
    %c0_7 = arith.constant 0 : index
    %9 = vector.load %arg4[%c8, %c0_7] : memref<40x32xbf16, #tpu.memory_space<vmem>>, vector<8x32xbf16>
    %cst_8 = arith.constant dense<0.000000e+00> : vector<18x32xf32>
    %10 = tpu.matmul %8, %9, %cst_8 {dimension_numbers = #tpu.dot_dimension_numbers<[1], [0], [0], [1], [0, 0, 1, 1], [], []>} : vector<18x8xbf16>, vector<8x32xbf16>, vector<18x32xf32> -> vector<18x32xf32>
    %11 = arith.addf %7, %10 : vector<18x32xf32>
    %12 = vector.extract_strided_slice %4 {offsets = [2, 0], sizes = [18, 8], strides = [1, 1]} : vector<22x8xbf16> to vector<18x8xbf16>
    %c16 = arith.constant 16 : index
    %c0_9 = arith.constant 0 : index
    %13 = vector.load %arg4[%c16, %c0_9] : memref<40x32xbf16, #tpu.memory_space<vmem>>, vector<8x32xbf16>
    %cst_10 = arith.constant dense<0.000000e+00> : vector<18x32xf32>
    %14 = tpu.matmul %12, %13, %cst_10 {dimension_numbers = #tpu.dot_dimension_numbers<[1], [0], [0], [1], [0, 0, 1, 1], [], []>} : vector<18x8xbf16>, vector<8x32xbf16>, vector<18x32xf32> -> vector<18x32xf32>
    %15 = arith.addf %11, %14 : vector<18x32xf32>
    %16 = vector.extract_strided_slice %4 {offsets = [3, 0], sizes = [18, 8], strides = [1, 1]} : vector<22x8xbf16> to vector<18x8xbf16>
    %c24 = arith.constant 24 : index
    %c0_11 = arith.constant 0 : index
    %17 = vector.load %arg4[%c24, %c0_11] : memref<40x32xbf16, #tpu.memory_space<vmem>>, vector<8x32xbf16>
    %cst_12 = arith.constant dense<0.000000e+00> : vector<18x32xf32>
    %18 = tpu.matmul %16, %17, %cst_12 {dimension_numbers = #tpu.dot_dimension_numbers<[1], [0], [0], [1], [0, 0, 1, 1], [], []>} : vector<18x8xbf16>, vector<8x32xbf16>, vector<18x32xf32> -> vector<18x32xf32>
    %19 = arith.addf %15, %18 : vector<18x32xf32>
    %20 = vector.extract_strided_slice %4 {offsets = [4, 0], sizes = [18, 8], strides = [1, 1]} : vector<22x8xbf16> to vector<18x8xbf16>
    %c32 = arith.constant 32 : index
    %c0_13 = arith.constant 0 : index
    %21 = vector.load %arg4[%c32, %c0_13] : memref<40x32xbf16, #tpu.memory_space<vmem>>, vector<8x32xbf16>
    %cst_14 = arith.constant dense<0.000000e+00> : vector<18x32xf32>
    %22 = tpu.matmul %20, %21, %cst_14 {dimension_numbers = #tpu.dot_dimension_numbers<[1], [0], [0], [1], [0, 0, 1, 1], [], []>} : vector<18x8xbf16>, vector<8x32xbf16>, vector<18x32xf32> -> vector<18x32xf32>
    %23 = arith.addf %19, %22 : vector<18x32xf32>
    %c0_15 = arith.constant 0 : index
    %c0_16 = arith.constant 0 : index
    %24 = vector.load %arg5[%c0_15, %c0_16] : memref<1x32xf32, #tpu.memory_space<vmem>>, vector<1x32xf32>
    %25 = vector.shape_cast %24 : vector<1x32xf32> to vector<32xf32>
    %26 = vector.shape_cast %25 : vector<32xf32> to vector<1x32xf32>
    %27 = vector.broadcast %26 : vector<1x32xf32> to vector<18x32xf32>
    %28 = arith.addf %23, %27 : vector<18x32xf32>
    %cst_17 = arith.constant 0.000000e+00 : f32
    %29 = vector.broadcast %cst_17 : f32 to vector<18x32xf32>
    %30 = arith.maximumf %28, %29 : vector<18x32xf32>
    %c16_i32 = arith.constant 16 : i32
    %31 = arith.muli %arg1, %c16_i32 : i32
    %32 = tpu.iota {dimensions = array<i32: 0>} : vector<18x1xi32>
    %33 = vector.broadcast %31 : i32 to vector<18x1xi32>
    %34 = arith.addi %33, %32 : vector<18x1xi32>
    %c1_i32 = arith.constant 1 : i32
    %35 = vector.broadcast %c1_i32 : i32 to vector<18x1xi32>
    %36 = arith.subi %34, %35 : vector<18x1xi32>
    %c0_i32 = arith.constant 0 : i32
    %37 = vector.broadcast %c0_i32 : i32 to vector<18x1xi32>
    %38 = arith.cmpi sge, %36, %37 : vector<18x1xi32>
    %c48_i32 = arith.constant 48 : i32
    %39 = vector.broadcast %c48_i32 : i32 to vector<18x1xi32>
    %40 = arith.cmpi slt, %36, %39 : vector<18x1xi32>
    %41 = arith.andi %38, %40 : vector<18x1xi1>
    %cst_18 = arith.constant 0.000000e+00 : f32
    %42 = vector.shape_cast %41 : vector<18x1xi1> to vector<18x1xi1>
    %43 = vector.broadcast %42 : vector<18x1xi1> to vector<18x32xi1>
    %44 = vector.broadcast %cst_18 : f32 to vector<18x32xf32>
    %45 = arith.select %43, %30, %44 : vector<18x32xi1>, vector<18x32xf32>
    %46 = arith.truncf %45 : vector<18x32xf32> to vector<18x32xbf16>
    %47 = vector.extract_strided_slice %46 {offsets = [0, 0], sizes = [16, 32], strides = [1, 1]} : vector<18x32xbf16> to vector<16x32xbf16>
    %c0_19 = arith.constant 0 : index
    %c0_20 = arith.constant 0 : index
    %48 = vector.load %arg6[%c0_19, %c0_20] : memref<96x128xbf16, #tpu.memory_space<vmem>>, vector<32x128xbf16>
    %cst_21 = arith.constant dense<0.000000e+00> : vector<16x128xf32>
    %49 = tpu.matmul %47, %48, %cst_21 {dimension_numbers = #tpu.dot_dimension_numbers<[1], [0], [0], [1], [0, 0, 1, 1], [], []>} : vector<16x32xbf16>, vector<32x128xbf16>, vector<16x128xf32> -> vector<16x128xf32>
    %50 = vector.extract_strided_slice %46 {offsets = [1, 0], sizes = [16, 32], strides = [1, 1]} : vector<18x32xbf16> to vector<16x32xbf16>
    %c32_22 = arith.constant 32 : index
    %c0_23 = arith.constant 0 : index
    %51 = vector.load %arg6[%c32_22, %c0_23] : memref<96x128xbf16, #tpu.memory_space<vmem>>, vector<32x128xbf16>
    %cst_24 = arith.constant dense<0.000000e+00> : vector<16x128xf32>
    %52 = tpu.matmul %50, %51, %cst_24 {dimension_numbers = #tpu.dot_dimension_numbers<[1], [0], [0], [1], [0, 0, 1, 1], [], []>} : vector<16x32xbf16>, vector<32x128xbf16>, vector<16x128xf32> -> vector<16x128xf32>
    %53 = arith.addf %49, %52 : vector<16x128xf32>
    %54 = vector.extract_strided_slice %46 {offsets = [2, 0], sizes = [16, 32], strides = [1, 1]} : vector<18x32xbf16> to vector<16x32xbf16>
    %c64 = arith.constant 64 : index
    %c0_25 = arith.constant 0 : index
    %55 = vector.load %arg6[%c64, %c0_25] : memref<96x128xbf16, #tpu.memory_space<vmem>>, vector<32x128xbf16>
    %cst_26 = arith.constant dense<0.000000e+00> : vector<16x128xf32>
    %56 = tpu.matmul %54, %55, %cst_26 {dimension_numbers = #tpu.dot_dimension_numbers<[1], [0], [0], [1], [0, 0, 1, 1], [], []>} : vector<16x32xbf16>, vector<32x128xbf16>, vector<16x128xf32> -> vector<16x128xf32>
    %57 = arith.addf %53, %56 : vector<16x128xf32>
    %c0_27 = arith.constant 0 : index
    %c0_28 = arith.constant 0 : index
    %58 = vector.load %arg7[%c0_27, %c0_28] : memref<1x128xf32, #tpu.memory_space<vmem>>, vector<1x128xf32>
    %59 = vector.shape_cast %58 : vector<1x128xf32> to vector<128xf32>
    %60 = vector.shape_cast %59 : vector<128xf32> to vector<1x128xf32>
    %61 = vector.broadcast %60 : vector<1x128xf32> to vector<16x128xf32>
    %62 = arith.addf %57, %61 : vector<16x128xf32>
    %63 = arith.truncf %62 : vector<16x128xf32> to vector<16x128xbf16>
    %c0_29 = arith.constant 0 : index
    %c0_30 = arith.constant 0 : index
    %c0_31 = arith.constant 0 : index
    %64 = vector.load %arg8[%c0_29, %c0_30, %c0_31] : memref<1x16x128xbf16, #tpu.memory_space<vmem>>, vector<1x16x128xbf16>
    %65 = vector.shape_cast %64 : vector<1x16x128xbf16> to vector<16x128xbf16>
    %66 = vector.shape_cast %63 : vector<16x128xbf16> to vector<1x16x128xbf16>
    tpu.vector_store %arg8[%c0_29, %c0_30, %c0_31], %66 {strides = array<i32>} : memref<1x16x128xbf16, #tpu.memory_space<vmem>>, vector<1x16x128xbf16>,
    return
  }
  func.func @transform_0(%arg0: i32, %arg1: i32) -> (i32, i32, i32) {
    %c0_i32 = arith.constant 0 : i32
    %c0_i32_0 = arith.constant 0 : i32
    return %arg0, %arg1, %c0_i32 : i32, i32, i32
  }
  func.func @transform_1(%arg0: i32, %arg1: i32) -> (i32, i32, i32) {
    %c1_i32 = arith.constant 1 : i32
    %0 = arith.addi %arg1, %c1_i32 : i32
    %c1_i32_0 = arith.constant 1 : i32
    %1 = arith.muli %0, %c1_i32_0 : i32
    %c0_i32 = arith.constant 0 : i32
    %c0_i32_1 = arith.constant 0 : i32
    return %arg0, %1, %c0_i32 : i32, i32, i32
  }
  func.func @transform_2(%arg0: i32, %arg1: i32) -> (i32, i32) {
    %c0_i32 = arith.constant 0 : i32
    %c0_i32_0 = arith.constant 0 : i32
    %c0_i32_1 = arith.constant 0 : i32
    return %c0_i32, %c0_i32_0 : i32, i32
  }
  func.func @transform_3(%arg0: i32, %arg1: i32) -> (i32, i32) {
    %c0_i32 = arith.constant 0 : i32
    %c0_i32_0 = arith.constant 0 : i32
    %c0_i32_1 = arith.constant 0 : i32
    return %c0_i32, %c0_i32_0 : i32, i32
  }
  func.func @transform_4(%arg0: i32, %arg1: i32) -> (i32, i32) {
    %c0_i32 = arith.constant 0 : i32
    %c0_i32_0 = arith.constant 0 : i32
    %c0_i32_1 = arith.constant 0 : i32
    return %c0_i32, %c0_i32_0 : i32, i32
  }
  func.func @transform_5(%arg0: i32, %arg1: i32) -> (i32, i32) {
    %c0_i32 = arith.constant 0 : i32
    %c0_i32_0 = arith.constant 0 : i32
    %c0_i32_1 = arith.constant 0 : i32
    return %c0_i32, %c0_i32_0 : i32, i32
  }
  func.func @transform_6(%arg0: i32, %arg1: i32) -> (i32, i32, i32) {
    %c0_i32 = arith.constant 0 : i32
    %c0_i32_0 = arith.constant 0 : i32
    return %arg0, %arg1, %c0_i32 : i32, i32, i32
  }
}

</mosaic_0001>

<bundles_post_ra>
// kernel: tpu_custom_call.1
= control target key start
LH: loop header
LB: loop body
LE: loop exit
PB: predicated region body
PF: predicated region fallthrough
CT: control target
= control target key end

     0   :  { %11 = vsyncpa [#allocation3], 0  ;;  %s1286_s0 = inlined_call_operand.vmem [shape: bf16[2,64,8], index: 0, kind: input, shape index: {}]   ;;  %s1287_s1 = inlined_call_operand.vmem [shape: bf16[2,64,8], index: 1, kind: input, shape index: {}]   ;;  %s1288_s2 = inlined_call_operand.vmem [shape: bf16[40,32], index: 2, kind: input, shape index: {}]   ;;  %s1289_s3 = inlined_call_operand.vmem [shape: f32[1,32], index: 3, kind: input, shape index: {}]   ;;  %s1290_s4 = inlined_call_operand.vmem [shape: bf16[96,128], index: 4, kind: input, shape index: {}]   ;;  %s1291_s5 = inlined_call_operand.vmem [shape: f32[1,128], index: 5, kind: input, shape index: {}]   ;;  %s1292_s6 = inlined_call_operand.hbm [shape: bf16[2,48,128], index: 6, kind: output, shape index: {}]  }
   0x1   :  { %13 = vsyncpa [#allocation3 + $0x1], 0  ;;  %s1095_s21 = smov 0   ;;  %s1097_s22 = smov 0  }
   0x2   :  { %s1099_s23 = smov 0   ;;  %s1101_s24 = smov 0  }
   0x3   :  { %s1103_s25 = smov 0   ;;  %s1105_s26 = smov 0  }
   0x4   :  { %s1107_s27 = smov 0   ;;  %s1109_s28 = smov 0  }
   0x5 LB: > { %s810_s29 = sadd.s32 4294967295, %s1056_s28   ;;  %s811_s30 = sadd.s32 4294967294, %s1056_s28   ;;  %s1056_s28 = sphi %s1109_s28, %s19_s28   ;;  %s1052_s27 = sphi %s1107_s27, %s1307_s27   ;;  %s1048_s26 = sphi %s1105_s26, %s1306_s26   ;;  %s1044_s25 = sphi %s1103_s25, %s1305_s25   ;;  %s1040_s24 = sphi %s1101_s24, %s1304_s24   ;;  %s1036_s23 = sphi %s1099_s23, %s1303_s23   ;;  %s1032_s22 = sphi %s1097_s22, %s1302_s22   ;;  %s1028_s21 = sphi %s1095_s21, %s1301_s21  }
   0x6   : > { %s28_s7 = sadd.s32 1, %s1048_s26  ;;  %s31_s8 = sadd.s32 1, %s1052_s27 }
   0x7   : > { %p29_p0 = scmp.ge.s32.totalorder %s28_s7, 3  ;;  %p192_p1 = scmp.ne.s32.totalorder %s1036_s23, %s1032_s22 }
   0x8   : > { %p193_p2 = scmp.eq.s32.totalorder %s810_s29, 5  ;;  %p198_p5 = scmp.ne.s32.totalorder %s1032_s22, %s1028_s21 }
   0x9   : > { %s1309_s7 = smov (%p29_p0, %s28_s7), 0  ;;  %s1311_s8 = smov (!%p29_p0, %s31_s8), %s1052_s27 }
   0xa   : > { %1295 = sst [smem:[#allocation5_spill]] %s1309_s7  ;;  %s178_s9 = ssub.s32 %s1048_s26, %s1309_s7 }
   0xb   : > { %p1146_p3 = por %p193_p2, %p192_p1  ;;  %p33_p4 = scmp.ge.s32.totalorder %s1311_s8, 2 }
   0xc   : > { %p199_p6 = scmp.eq.s32.totalorder %s811_s30, 5  ;;  %p814_p7 = scmp.ge.s32.totalorder %s1056_s28, 1 }
   0xd   : > { %s1313_s8 = smov (%p33_p4, %s1311_s8), 0  ;;  %p257_p9 = scmp.lt.s32.totalorder %s1056_s28, 7 }
   0xe   : > { %1297 = sst [smem:[#allocation6_spill]] %s1313_s8  ;;  %p1155_p8 = por %p199_p6, %p198_p5 }
   0xf   : > { %s177_s12 = ssub.s32 %s1052_s27, %s1313_s8  ;;  %s182_s13 = sadd.s32 1, %s1036_s23 }
  0x10   : > { %s179_s14 = sor.u32 %s178_s9, %s177_s12  ;;  %p258_p10 = pnand %p814_p7, %p257_p9 }
  0x11   : > { %p180_p11 = scmp.eq.s32.totalorder %s179_s14, 0  ;;  %s1170_s18 = sshll.u32 (!%p258_p10), %s1040_s24, 1 }
  0x12   : > { %261 = sbr.rel (%p258_p10) target bundleno = 378 (0x17a), region = 44  ;;  %p302_p12 = scmp.lt.s32.totalorder (!%p258_p10), %s1044_s25, 1 }
  0x13   : > { %s1164_s15 = scalar_select %p180_p11, %s1036_s23, %s182_s13  }
  0x14   : > { %p304_p13 = scmp.lt.s32.totalorder (!%p258_p10), %s1170_s18, 7  ;;  %s873_s19 = sadd.s32 (!%p258_p10), 2, %s1170_s18 }
  0x15   : > { %p315_p0 = scmp.lt.s32.totalorder (!%p258_p10), %s873_s19, 7 }
  0x17   : > { %vm358_vm0 = vcmask 1043456   ;;  %v405_v0 = vld [vmem:[%s1288_s2 + $0x8] sm:$0xf]  ;;  %v334_v2 = vld [vmem:[%s1288_s2 + $0x4] sm:$0xf]  ;;  %s303_s30 = scalar_select %p302_p12, %s1044_s25, 1  ;;  %v526_v50 = vlaneseq }
  0x18   : > { %v418_v1 = vsel %vm358_vm0, %v405_v0, 0  ;;  %v360_v3 = vsel %vm358_vm0, %v334_v2, 0  ;;  %v333_v4 = vld [vmem:[%s1288_s2] sm:$0xf]  ;;  %v441_v5 = vld [vmem:[%s1288_s2 + $0xc] sm:$0xf] }
  0x19   : > { %427 = vmatpush.bf16.msra.mxu2 %v418_v1  ;;  %s305_s16 = scalar_select %p304_p13, %s1170_s18, 7  ;;  %369 = vmatpush.bf16.msra.mxu0 %v360_v3  ;;  %v385_v6 = vsel %vm358_vm0, %v333_v4, 0  ;;  %v457_v7 = vsel %vm358_vm0, %v441_v5, 0  ;;  %v480_v8 = vld [vmem:[%s1288_s2 + $0x10] sm:$0xf]  ;;  %vm351_vm1 = vcmask 64512  }
  0x1a   : > { %s817_s17 = sshll.u32 %s303_s30, 3  ;;  %394 = vmatpush.bf16.msra.mxu1 %v385_v6  ;;  %466 = vmatpush.bf16.msra.mxu3 %v457_v7  ;;  %v492_v9 = vsel %vm358_vm0, %v480_v8, 0  ;;  %s1315_s19 = smov (!%p315_p0, %s873_s19), 7  ;;  %vm407_vm2 = vcmask 1046528   ;;  %vm335_vm3 = vsmask.f32 7424 }
  0x1b   : > { %s307_s9 = sadd.s32 %s817_s17, %s305_s16  ;;  %s318_s30 = sadd.s32 %s817_s17, %s1315_s19  ;;  %vm442_vm4 = vsmask.f32 6400  ;;  %vm481_vm5 = vcmask 1045504   ;;  %v876_v35 = vld [vmem:[%s1290_s4 + $0x8] sm:$0xff]  ;;  %v878_v43 = vld [vmem:[%s1290_s4 + $0x18] sm:$0xff]  ;;  %v875_v48 = vld [vmem:[%s1290_s4] sm:$0xff] }
  0x1c   : > { %s818_s12 = sshll.u32 %s307_s9, 2  ;;  %s821_s7 = sshll.u32 %s318_s30, 2  ;;  %v880_v42 = vld [vmem:[%s1290_s4 + $0x28] sm:$0xff]  ;;  %v527_v54 = vshrl.u32 %v526_v50, 7  ;;  %v879_v60 = vld [vmem:[%s1290_s4 + $0x20] sm:$0xff]  ;;  %v877_v61 = vld [vmem:[%s1290_s4 + $0x10] sm:$0xff] }
  0x1d   : > { %501 = vmatpush.bf16.msrb.mxu0 %v492_v9  ;;  %s309_s8 = scalar_lea.vmem %s1286_s0, %s818_s12  ;;  %s320_s16 = scalar_lea.vmem %s1287_s1, %s821_s7  ;;  %636 = vmatpush.bf16.msrb.mxu2 %v876_v35  ;;  %v960_v63 = vld [vmem:[%s1289_s3] ss:$0 sm:$0xff]  ;;  %vm598_vm14 = vcmask 261120  }
  0x1e   : > { %v874_v10 = vld [vmem:[%s309_s8] sm:$0xff]  ;;  %672 = vmatpush.bf16.msrb.mxu3 %v880_v42  ;;  %608 = vmatpush.bf16.msrb.mxu1 %v878_v43  ;;  %s836_s30 = sshll.u32 %s1040_s24, 4  ;;  %v528_v56 = vadd.s32 8, %v527_v54  ;;  %v529_v9 = vadd.s32 16, %v527_v54  ;;  %s886_s19 = smul.u32 6, %s1044_s25 }
  0x1f   : > { %v337_v11 = vshrl.u32 %v874_v10, 16  ;;  %v339_v12 = vshll.u32 %v874_v10, 16  ;;  %828 = vmatmul.msk.bf16.vlgmr.msra.gmra.mxu1 %vm351_vm1, %v874_v10  ;;  %v408_v13 = vrot.slane %v874_v10, 1  ;;  %v327_v17 = vld [vmem:[%s320_s16] sm:$0x7]  ;;  %v482_v31 = vrot.slane %v874_v10, 2 }
  0x20   : > { %v409_v18 = vrot.slane %v327_v17, 1  ;;  %v344_v20 = vshll.u32 %v327_v17, 16  ;;  %v348_v21 = vshrl.u32 %v327_v17, 16  ;;  %v483_v32 = vrot.slane %v327_v17, 2  ;;  %s298_s17 = sand.u32 1, %s1032_s22   ;;  %s704_s9 = sadd.s32 %s886_s19, %s1170_s18 }
  0x21   : > { %v341_v14 = vrot.slane %v339_v12, 1  ;;  %v443_v15 = vrot.slane %v337_v11, 1  ;;  %v444_v16 = vrot.slane %v339_v12, 2  ;;  %637 = vmatpush.bf16.msrb.mxu2 %v875_v48  ;;  %v530_v55 = vstv %s836_s30  ;;  %s815_s12 = sshll.u32 %s298_s17, 3  ;;  %s869_s13 = sshll.u32 %s704_s9, 2 }
  0x22   : > { %v410_v23 = vsel %vm407_vm2, %v408_v13, %v409_v18  ;;  %v346_v24 = vrot.slane %v344_v20, 1  ;;  %v446_v25 = vrot.slane %v348_v21, 1  ;;  %v447_v26 = vrot.slane %v344_v20, 2  ;;  %673 = vmatpush.bf16.msrb.mxu3 %v879_v60  ;;  %609 = vmatpush.bf16.msrb.mxu1 %v877_v61  ;;  %s706_s16 = scalar_lea.hbm %s1292_s6, %s869_s13  ;;  %s300_s25 = scalar_lea.vmem [#allocation2], %s815_s12 }
  0x23   : > { %v342_v19 = vor.u32 %v341_v14, %v337_v11  ;;  %v445_v22 = vor.u32 %v444_v16, %v443_v15  ;;  %830 = vmatmul.msk.bf16.vlgmr.msra.gmra.mxu2 %vm351_vm1, %v410_v23  ;;  %v484_v33 = vsel %vm481_vm5, %v482_v31, %v483_v32  ;;  %v531_v59 = vadd.s32 %v530_v55, %v527_v54  ;;  %v961_v54 = vld [vmem:[%s1291_s5] ss:$0 sm:$0xff]  ;;  %s707_s18 = sshll.u32 %s300_s25, 4  ;;  %s709_s7 = sshll.u32 %s706_s16, 4  ;;  %s708_s18 = int_to_ptr.vmem [resolvable:$true] %s707_s18  ;;  %s710_s7 = int_to_ptr.hbm [resolvable:$true] %s709_s7 }
  0x24   : > { %v448_v28 = vor.u32 %v447_v26, %v446_v25  ;;  %v350_v30 = vor.u32 %v348_v21, %v346_v24  ;;  %v532_v1 = vadd.s32 %v530_v55, %v528_v56  ;;  %v533_v15 = vadd.s32 %v530_v55, %v529_v9  ;;  %s693_s8 = scalar_lea.sflag [#allocation3], %s298_s17  ;;  %s976_s24 = sshra.s32 %s710_s7, 4  ;;  %s977_s24 = int_to_ptr.hbm [resolvable:$true] %s976_s24 }
  0x25   : > { %v347_v27 = vsel %vm335_vm3, %v342_v19, %v346_v24  ;;  %v837_v5 = vadd.s32 4294967295, %v531_v59  ;;  %s978_s19 = scalar_lea.hbm %s977_s24, 8  ;;  %s982_s12 = scalar_lea.hbm %s1292_s6, 48 }
  0x26   : > { %826 = vmatmul.msk.bf16.vlgmr.msra.gmra.mxu0 %vm351_vm1, %v347_v27  ;;  %v449_v29 = vsel %vm442_vm4, %v445_v22, %v448_v28  ;;  %v838_v7 = vadd.s32 4294967295, %v532_v1  ;;  %v839_v20 = vadd.s32 4294967295, %v533_v15  ;;  %p979_p1 = scmp.ne.s32.totalorder %s977_s24, %s978_s19  ;;  %p983_p5 = scmp.lt.s32.totalorder %s977_s24, %s1292_s6 }
  0x27   : > { %832 = vmatmul.msk.bf16.vlgmr.msra.gmra.mxu3 %vm351_vm1, %v449_v29  ;;  %vm537_vm6 = vcmp.ge.s32.totalorder %v837_v5, 0  ;;  %vm540_vm7 = vcmp.lt.s32.totalorder %v837_v5, 48  ;;  %p984_p6 = scmp.lt.s32.totalorder %s982_s12, %s978_s19 }
  0x28   : > { %vm543_vm8 = vmand %vm537_vm6, %vm540_vm7  ;;  %vm538_vm9 = vcmp.ge.s32.totalorder %v838_v7, 0  ;;  %vm541_vm10 = vcmp.lt.s32.totalorder %v838_v7, 48  ;;  %vm539_vm12 = vcmp.ge.s32.totalorder %v839_v20, 0  ;;  %vm542_vm13 = vcmp.lt.s32.totalorder %v839_v20, 48  ;;  %p980_p2 = pnand %p979_p1, %p1146_p3 }
  0x29   : > { %vm544_vm11 = vmand %vm538_vm9, %vm541_vm10  ;;  %p985_p7 = por %p984_p6, %p983_p5 }
  0x2a   : > { %vm545_vm15 = vmand %vm539_vm12, %vm542_vm13  ;;  %p981_p4 = pneg %p980_p2 }
  0x2c   : > { %p986_p9 = pnand %p985_p7, %p981_p4 }
  0x2f   : > { %829 = vmatmul.msk.bf16.gmra.mxu1 %vm351_vm1, %v327_v17 }
  0x33   : > { %831 = vmatmul.msk.bf16.gmra.mxu2 %vm351_vm1, %v409_v18 }
  0x36   : > { %827 = vmatmul.msk.bf16.gmra.mxu0 %vm351_vm1, %v350_v30 }
  0x37   : > { %833 = vmatmul.msk.bf16.gmra.mxu3 %vm351_vm1, %v448_v28 }
  0x46   : > { %834 = vmatmul.msk.bf16.vlgmr.msrb.gmra.mxu0 %vm351_vm1, %v484_v33 }
  0x56   : > { %835 = vmatmul.msk.bf16.gmra.mxu0 %vm351_vm1, %v483_v32 }
  0x9c   : > { %v396_v34 = vpop.f32.mrf.mxu1 }
  0xa3   : > { %v371_v37 = vpop.f32.mrf.mxu0 }
  0xa4   : > { %v398_v36 = vpop.f32.mrf.mxu1  ;;  %v397_v53 = vadd.f32 %v396_v34, %v371_v37 }
  0xa6   : > { %v429_v38 = vpop.f32.mrf.mxu2 }
  0xa7   : > { %v438_v58 = vadd.f32 %v429_v38, %v397_v53 }
  0xaa   : > { %v468_v40 = vpop.f32.mrf.mxu3 }
  0xab   : > { %v373_v41 = vpop.f32.mrf.mxu0  ;;  %v477_v62 = vadd.f32 %v468_v40, %v438_v58 }
  0xac   : > { %v401_v39 = vpop.f32.mrf.mxu1  ;;  %v399_v3 = vadd.f32 %v398_v36, %v373_v41 }
  0xae   : > { %v431_v44 = vpop.f32.mrf.mxu2 }
  0xaf   : > { %v439_v8 = vadd.f32 %v431_v44, %v399_v3 }
  0xb2   : > { %v470_v46 = vpop.f32.mrf.mxu3 }
  0xb3   : > { %v376_v47 = vpop.f32.mrf.mxu0  ;;  %v478_v10 = vadd.f32 %v470_v46, %v439_v8 }
  0xb4   : > { %v403_v45 = vpop.f32.mrf.mxu1  ;;  %v402_v13 = vadd.f32 %v401_v39, %v376_v47 }
  0xb6   : > { %v434_v49 = vpop.f32.mrf.mxu2 }
  0xb7   : > { %v440_v18 = vadd.f32 %v434_v49, %v402_v13 }
  0xba   : > { %v473_v51 = vpop.f32.mrf.mxu3 }
  0xbb   : > { %v378_v52 = vpop.f32.mrf.mxu0  ;;  %v479_v22 = vadd.f32 %v473_v51, %v440_v18 }
  0xbe   : > { %v436_v57 = vpop.f32.mrf.mxu2 }
  0xc2   : > { %v475_v2 = vpop.f32.mrf.mxu3 }
  0xc3   : > { %v503_v0 = vpop.f32.mrf.mxu0 }
  0xc4   : > { %v512_v4 = vadd.f32 %v503_v0, %v477_v62 }
  0xc6   : > { %v519_v6 = vadd.f32 %v960_v63, %v512_v4 }
  0xc8   : > { %v522_v11 = vmax.f32 %v519_v6, 0.0 }
  0xca   : > { %v552_v16 = vsel %vm543_vm8, %v522_v11, 0.0 }
  0xcb   : > { %v505_v12 = vpop.f32.mrf.mxu0  ;;  %v555_v21 = vpack.c.bf16 %v552_v16, %v552_v16 }
  0xcc   : > { %v513_v14 = vadd.f32 %v505_v12, %v478_v10 }
  0xcd   : > { %v569_v27 = vunpack.c.l.b16 %v555_v21 }
  0xce   : > { %v520_v17 = vadd.f32 %v960_v63, %v513_v14 }
  0xd0   : > { %v523_v19 = vmax.f32 %v520_v17, 0.0 }
  0xd2   : > { %v553_v23 = vsel %vm544_vm11, %v523_v19, 0.0 }
  0xd3   : > { %v556_v24 = vpack.c.bf16 %v553_v23, %v553_v23  ;;  %v508_v25 = vpop.f32.mrf.mxu0 }
  0xd4   : > { %v514_v26 = vadd.f32 %v508_v25, %v479_v22 }
  0xd5   : > { %v570_v28 = vunpack.c.l.b16 %v556_v24 }
  0xd6   : > { %v521_v29 = vadd.f32 %v960_v63, %v514_v26 }
  0xd7   : > { %v572_v30 = vpack.c.b16 %v570_v28, %v569_v27 }
  0xd8   : > { %v524_v31 = vmax.f32 %v521_v29, 0.0 }
  0xd9   : > { %857 = vmatmul.msk.bf16.vlgmr.msrb.gmra.mxu2 %vm598_vm14, %v572_v30  ;;  %v577_v35 = vshll.u32 %v572_v30, 16  ;;  %v648_v40 = vrot.slane %v572_v30, 1  ;;  %v575_v42 = vshrl.u32 %v572_v30, 16 }
  0xda   : > { %v554_v32 = vsel %vm545_vm15, %v524_v31, 0.0 }
  0xdb   : > { %v557_v33 = vpack.c.bf16 %v554_v32, %v554_v32  ;;  %v510_v34 = vpop.f32.mrf.mxu0  ;;  %v579_v38 = vrot.slane %v577_v35, 1 }
  0xdd   : > { %v571_v36 = vunpack.c.l.b16 %v557_v33  ;;  %v580_v44 = vor.u32 %v579_v38, %v575_v42 }
  0xdf   : > { %v573_v37 = vpack.c.b16 %v571_v36, %v571_v36 }
  0xe1   : > { %v582_v39 = vshll.u32 %v573_v37, 16  ;;  %v649_v41 = vrot.slane %v573_v37, 1 }
  0xe3   : > { %v650_v43 = vsel %vm407_vm2, %v648_v40, %v649_v41  ;;  %v584_v45 = vrot.slane %v582_v39, 1 }
  0xe4   : > { %866 = vmatmul.msk.bf16.vlgmr.msrb.gmra.mxu3 %vm598_vm14, %v650_v43 }
  0xe5   : > { %v585_v46 = vsel %vm335_vm3, %v580_v44, %v584_v45 }
  0xe6   : > { %848 = vmatmul.msk.bf16.vlgmr.msrb.gmra.mxu1 %vm598_vm14, %v585_v46 }
 0x15c   : > { %v639_v47 = vpop.f32.mrf.mxu2 }
 0x163   : > { %v611_v48 = vpop.f32.mrf.mxu1 }
 0x164   : > { %v640_v51 = vadd.f32 %v639_v47, %v611_v48  ;;  %v641_v52 = vpop.f32.mrf.mxu2 }
 0x167   : > { %v675_v49 = vpop.f32.mrf.mxu3 }
 0x168   : > { %v680_v53 = vadd.f32 %v675_v49, %v640_v51 }
 0x16a   : > { %v686_v58 = vadd.f32 %v961_v54, %v680_v53 }
 0x16b   : > { %v613_v50 = vpop.f32.mrf.mxu1 }
 0x16c   : > { %v642_v55 = vadd.f32 %v641_v52, %v613_v50 }
 0x16f   : > { %v677_v56 = vpop.f32.mrf.mxu3 }
 0x170   : > { %v681_v57 = vadd.f32 %v677_v56, %v642_v55 }
 0x172   : > { %v687_v59 = vadd.f32 %v961_v54, %v681_v57 }
 0x174   : > { %v884_v60 = vpack.c.bf16 %v687_v59, %v686_v58 }
 0x176   : > { %885 = vst [vmem:[%s300_s25] sm:$0xff] %v884_v60  }
 0x177   : > { %989 = shalt.err (!%p986_p9)
}
 0x178   : > { %s1058_s17 = smov 64   ;;  %s1059_s20 = smov 4  }
 0x179   : > { %887 = dma.vmem_to_hbm [thread:$0]  (%p1146_p3), %s708_s18, 128, %s710_s7, %s693_s8, %s1058_s17, %s1058_s17, %s1059_s20  }
 0x17a PF: > { %p893_p10 = scmp.ge.s32.totalorder %s1056_s28, 2  ;;  %s724_s29 = sand.u32 1, %s1028_s21  }
 0x17b   : > { %s725_s16 = scalar_lea.sflag [#allocation3], %s724_s29 }
 0x17c   : > { %p890_p11 = pnand %p893_p10, %p1155_p8 }
 0x17e   : > { %p891_p12 = pneg %p890_p11 }
 0x180   : > { %1023 = dma.done.wait (%p891_p12), %s725_s16, 128  }
 0x181   : > { %1025 = vsyncadd (%p891_p12), %s725_s16, 4294967168  ;;  %s19_s28 = sadd.s32 1, %s1056_s28   ;;  %s1299_s10 = sld [smem:[#allocation5_spill]] }
 0x182   : > { %p16_p13 = scmp.ge.s32.totalorder %s19_s28, 8   ;;  %s1300_s18 = sld [smem:[#allocation6_spill]] }
 0x183   : > { %s1301_s21 = smov %s1032_s22  ;;  %s1302_s22 = smov %s1036_s23 }
 0x184   : > { %s1303_s23 = smov %s1164_s15  ;;  %s1304_s24 = smov %s1048_s26 }
 0x185   : > { %s1305_s25 = smov %s1052_s27  ;;  %18 = sbr.rel (!%p16_p13) target bundleno = 5 (0x5), region = 82 }
 0x187   : > { %s1306_s26 = smov %s1299_s10 }
 0x188   : > { %s1307_s27 = smov %s1300_s18 }
 0x18a   :  { %731 = vsyncpa [#allocation3], 1 }
 0x18b   :  { %733 = vsyncpa [#allocation3 + $0x1], 1 }

</bundles_post_ra>
